<compile_context>
chip_gen: v5e
topology: v5e:2x2
jax: 0.10.0
libtpu: 0.0.40
codegen_flags: <defaults>
</compile_context>

<pallas_src>
import itertools

import numpy as np
import jax
import jax.numpy as jnp
from jax.experimental import pallas as pl
from jax.experimental.pallas import tpu as pltpu

ALPHA = 0.25
GAMMA = 2.0                       # gamma == 2 -> use x*x instead of pow
W_CLASS, W_BBOX, W_GIOU = 1.0, 5.0, 1.0
EPS_GIOU = 1e-6
LANE = 128                        # TPU lane width; target / matched-pair axes pad to this


def _cxcywh_to_xyxy(cx, cy, w, h):
    return cx - 0.5 * w, cy - 0.5 * h, cx + 0.5 * w, cy + 0.5 * h


def _giou(px1, py1, px2, py2, tx1, ty1, tx2, ty2):
    area_p = (px2 - px1) * (py2 - py1)
    area_t = (tx2 - tx1) * (ty2 - ty1)
    iw = jnp.maximum(jnp.minimum(px2, tx2) - jnp.maximum(px1, tx1), 0.0)
    ih = jnp.maximum(jnp.minimum(py2, ty2) - jnp.maximum(py1, ty1), 0.0)
    inter = iw * ih
    union = area_p + area_t - inter
    iou = inter / (union + EPS_GIOU)
    ew = jnp.maximum(px2, tx2) - jnp.minimum(px1, tx1)
    eh = jnp.maximum(py2, ty2) - jnp.minimum(py1, ty1)
    enclose = ew * eh
    return iou - (enclose - union) / (enclose + EPS_GIOU)


# ---------------------------------------------------------------------------
# Kernel 1: Hungarian cost matrix, batch-blocked per grid step.
#   cost[b, q, t] = 1*focal_cls_cost + 5*L1(cxcywh) - 1*GIoU(xyxy)
# Target axis padded to 128 lanes (lane-dense output, unmasked vst).  Class
# cost = (Q x C) focal diff  @  (C x Tpad) one-hot built in-kernel, on the MXU.
# ---------------------------------------------------------------------------
def cost_kernel(logits_ref, pboxes_ref, labels_ref, tboxes_ref, cost_ref):
    x = logits_ref[...].astype(jnp.float32)                    # (Bb, Q, C)
    bb, q, c = x.shape
    tpad = labels_ref.shape[2]

    # focal class-cost term, 2 transcendentals per element (exp, log):
    #   -log(p) = softplus(-x) = max(-x,0)+log(1+e), -log(1-p) = softplus(x),
    #   sigmoid(x) derived from e = exp(-|x|).
    e = jnp.exp(-jnp.abs(x))
    sp = jnp.log(1.0 + e)
    p = jnp.where(x >= 0.0, 1.0, e) / (1.0 + e)                # sigmoid(x)
    neg = (1.0 - ALPHA) * (p * p) * (jnp.maximum(x, 0.0) + sp)         # -(1-a)*p^2*log(1-p)
    pos = ALPHA * ((1.0 - p) * (1.0 - p)) * (jnp.maximum(-x, 0.0) + sp)  # -a*(1-p)^2*log(p)
    diff = pos - neg                                           # (Bb, Q, C)

    # class-cost gather = one-hot + batched MXU matmul (bf16 in, f32 acc);
    # padded labels (-1) never match the class iota -> all-zero one-hot column.
    labels = labels_ref[...]                                   # (Bb, 1, Tpad) int32
    iota_c = jax.lax.broadcasted_iota(jnp.int32, (bb, c, tpad), 1)
    onehot = (labels == iota_c).astype(jnp.bfloat16)           # (Bb, C, Tpad)
    cls = jnp.einsum('bqc,bct->bqt', diff.astype(jnp.bfloat16), onehot,
                     preferred_element_type=jnp.float32)       # (Bb, Q, Tpad)

    pb = pboxes_ref[...].astype(jnp.float32)                   # (Bb, Q, 4)
    tb = tboxes_ref[...].astype(jnp.float32)                   # (Bb, 4, Tpad)
    pcx, pcy = pb[:, :, 0:1], pb[:, :, 1:2]                    # (Bb, Q, 1)
    pw, ph = pb[:, :, 2:3], pb[:, :, 3:4]
    tcx, tcy = tb[:, 0:1, :], tb[:, 1:2, :]                    # (Bb, 1, Tpad)
    tw, th = tb[:, 2:3, :], tb[:, 3:4, :]

    l1 = (jnp.abs(pcx - tcx) + jnp.abs(pcy - tcy)
          + jnp.abs(pw - tw) + jnp.abs(ph - th))               # (Bb, Q, Tpad)

    px1, py1, px2, py2 = _cxcywh_to_xyxy(pcx, pcy, pw, ph)
    tx1, ty1, tx2, ty2 = _cxcywh_to_xyxy(tcx, tcy, tw, th)
    giou = _giou(px1, py1, px2, py2, tx1, ty1, tx2, ty2)       # (Bb, Q, Tpad)

    cost_ref[...] = W_CLASS * cls + W_BBOX * l1 - W_GIOU * giou


def compute_cost_matrices(pred_logits, pred_boxes, labels_pad, tboxes_t):
    B, Q, C = pred_logits.shape
    tpad = tboxes_t.shape[2]
    # 2-way batch split: shards across v7x's two TensorCores; costs only one
    # extra grid step on single-TC v5e/v6e (caller pads B to even when B >= 2).
    grid_b = 2 if (B >= 2 and B % 2 == 0) else 1
    bb = B // grid_b
    return pl.pallas_call(
        cost_kernel,
        out_shape=jax.ShapeDtypeStruct((B, Q, tpad), jnp.float32),
        grid=(grid_b,),
        in_specs=[
            pl.BlockSpec((bb, Q, C), lambda i: (i, 0, 0)),
            pl.BlockSpec((bb, Q, 4), lambda i: (i, 0, 0)),
            pl.BlockSpec((bb, 1, tpad), lambda i: (i, 0, 0)),
            pl.BlockSpec((bb, 4, tpad), lambda i: (i, 0, 0)),
        ],
        out_specs=pl.BlockSpec((bb, Q, tpad), lambda i: (i, 0, 0)),
        compiler_params=pltpu.CompilerParams(
            dimension_semantics=("parallel",)),
    )(pred_logits, pred_boxes, labels_pad, tboxes_t)


# ---------------------------------------------------------------------------
# Kernel 2: sigmoid focal loss partial sums over row blocks of the flattened
# (B*Q, C) logits.  Target classes arrive as an int32 column (background = C,
# padded rows = C with logits -100 -> exactly zero contribution); the one-hot
# is built in-kernel (halves HBM read traffic vs a dense f32 one-hot input).
# Each grid step writes its own lane-dense (1, 8, 128) partial block -> the
# grid axis is fully independent ("parallel", shards across v7x TCs) and the
# tiny cross-block reduction happens in the JAX wrapper.
# ---------------------------------------------------------------------------
def focal_sum_kernel(logits_ref, cls_ref, out_ref):
    x = logits_ref[...].astype(jnp.float32)                    # (RB, C)
    rb, c = x.shape
    cls = cls_ref[...]                                         # (RB, 1) int32
    t = (cls == jax.lax.broadcasted_iota(jnp.int32, (rb, c), 1)).astype(jnp.float32)
    # 2 transcendentals per element (exp, log); sigmoid derived from exp(-|x|).
    e = jnp.exp(-jnp.abs(x))
    bce = jnp.maximum(x, 0.0) - x * t + jnp.log(1.0 + e)
    p = jnp.where(x >= 0.0, 1.0, e) / (1.0 + e)                # sigmoid(x)
    pt = p * (1.0 - t) + (1.0 - p) * t
    focal_w = (ALPHA * t + (1.0 - ALPHA) * (1.0 - t)) * (pt * pt)
    out_ref[...] = jnp.full((1, 8, 128), jnp.sum(bce * focal_w), jnp.float32)


def compute_focal_sum(logits_flat, cls_col, rows_blk):
    npad, c = logits_flat.shape
    n_blk = npad // rows_blk
    partials = pl.pallas_call(
        focal_sum_kernel,
        out_shape=jax.ShapeDtypeStruct((n_blk, 8, 128), jnp.float32),
        grid=(n_blk,),
        in_specs=[
            pl.BlockSpec((rows_blk, c), lambda i: (i, 0)),
            pl.BlockSpec((rows_blk, 1), lambda i: (i, 0)),
        ],
        out_specs=pl.BlockSpec((1, 8, 128), lambda i: (i, 0, 0)),
        compiler_params=pltpu.CompilerParams(
            dimension_semantics=("parallel",)),
    )(logits_flat, cls_col)
    return jnp.sum(partials[:, 0, 0])


# ---------------------------------------------------------------------------
# Kernel 3: matched-box losses (tiny, lane-dense (4, M) layout, single step).
#   out[0] = L1 sum, out[1] = (1 - GIoU) sum    (un-normalized)
# ---------------------------------------------------------------------------
def box_loss_kernel(pm_ref, tm_ref, mask_ref, out_ref):
    pm = pm_ref[...].astype(jnp.float32)                       # (4, M)
    tm = tm_ref[...].astype(jnp.float32)                       # (4, M)
    msk = mask_ref[...].astype(jnp.float32)                    # (1, M)
    out_ref[0] = jnp.sum(jnp.abs(pm - tm) * msk)
    px1, py1, px2, py2 = _cxcywh_to_xyxy(pm[0:1, :], pm[1:2, :],
                                         pm[2:3, :], pm[3:4, :])
    tx1, ty1, tx2, ty2 = _cxcywh_to_xyxy(tm[0:1, :], tm[1:2, :],
                                         tm[2:3, :], tm[3:4, :])
    giou = _giou(px1, py1, px2, py2, tx1, ty1, tx2, ty2)       # (1, M)
    out_ref[1] = jnp.sum((1.0 - giou) * msk)


def compute_box_sums(pm_t, tm_t, mask):
    mpad = pm_t.shape[1]
    return pl.pallas_call(
        box_loss_kernel,
        out_shape=jax.ShapeDtypeStruct((2,), jnp.float32),
        grid=(1,),
        in_specs=[
            pl.BlockSpec((4, mpad), lambda i: (0, 0)),
            pl.BlockSpec((4, mpad), lambda i: (0, 0)),
            pl.BlockSpec((1, mpad), lambda i: (0, 0)),
        ],
        out_specs=pl.BlockSpec(memory_space=pltpu.MemorySpace.SMEM),
    )(pm_t, tm_t, mask)


# ---------------------------------------------------------------------------
# Host-side exact min-cost assignment (Jonker-Volgenant style shortest
# augmenting path, O(n^2 m)) — replaces scipy.linear_sum_assignment.
# TODO(synk): sequential/combinatorial matching has no clean Pallas equivalent.
# ---------------------------------------------------------------------------
def hungarian_assignment(cost):
    """cost: (n, m) with n <= m.  Returns match[i] = column assigned to row i."""
    a = np.asarray(cost, dtype=np.float64)
    n, m = a.shape
    assert n <= m
    INF = float("inf")
    u = np.zeros(n + 1)
    v = np.zeros(m + 1)
    p = np.zeros(m + 1, dtype=np.int64)       # p[j] = row matched to column j
    way = np.zeros(m + 1, dtype=np.int64)
    for i in range(1, n + 1):
        p[0] = i
        j0 = 0
        minv = np.full(m + 1, INF)
        used = np.zeros(m + 1, dtype=bool)
        while True:
            used[j0] = True
            i0 = p[j0]
            cur = a[i0 - 1, :] - u[i0] - v[1:]
            free = ~used[1:]
            better = free & (cur < minv[1:])
            minv[1:][better] = cur[better]
            way[1:][better] = j0
            cand = np.where(free, minv[1:], INF)
            j1 = int(np.argmin(cand)) + 1
            delta = cand[j1 - 1]
            u[p[used]] += delta
            v[used] -= delta
            minv[~used] -= delta
            j0 = j1
            if p[j0] == 0:
                break
        while j0 != 0:
            j1 = way[j0]
            p[j0] = p[j1]
            j0 = j1
    match = np.zeros(n, dtype=np.int64)
    for j in range(1, m + 1):
        if p[j] > 0:
            match[p[j] - 1] = j - 1
    return match


# ---------------------------------------------------------------------------
# DETR criterion forward
# ---------------------------------------------------------------------------
def detr_criterion(pred_logits, pred_boxes, target_labels_list, target_boxes_list):
    B, Q, C = pred_logits.shape
    nts = [int(len(l)) for l in target_labels_list]
    t_max = max(nts) if nts else 0

    # ---- step 1: cost matrices on TPU + Hungarian matching on host ----
    if t_max > 0:
        tpad = max(LANE, int(np.ceil(t_max / LANE)) * LANE)
        # even batch so the 2-way "parallel" batch split keeps both v7x TCs busy
        B_pad = B + (B % 2) if B >= 2 else B

        labels_pad = np.full((B_pad, 1, tpad), -1, np.int32)
        tboxes_t = np.full((B_pad, 4, tpad), 0.5, np.float32)
        for b in range(B):
            if nts[b] > 0:
                labels_pad[b, 0, :nts[b]] = np.asarray(target_labels_list[b], np.int32)
                tboxes_t[b, :, :nts[b]] = np.asarray(target_boxes_list[b], np.float32).T

        # pad Q to a multiple of 8 (sublane) for the cost kernel only
        qp = int(np.ceil(Q / 8)) * 8
        logits_c = pred_logits.astype(jnp.float32)
        boxes_c = pred_boxes.astype(jnp.float32)
        if qp != Q or B_pad != B:
            logits_c = jnp.pad(logits_c, ((0, B_pad - B), (0, qp - Q), (0, 0)))
            boxes_c = jnp.pad(boxes_c, ((0, B_pad - B), (0, qp - Q), (0, 0)),
                              constant_values=0.5)

        cost = compute_cost_matrices(logits_c, boxes_c,
                                     jnp.asarray(labels_pad), jnp.asarray(tboxes_t))

        # slice off batch / Q / target padding on device before the D2H transfer
        cost_host = np.asarray(jax.device_get(cost[:B, :Q, :t_max]))
        indices = []
        for b in range(B):
            nt = nts[b]
            if nt == 0:
                indices.append((np.zeros(0, np.int64), np.zeros(0, np.int64)))
                continue
            src = hungarian_assignment(cost_host[b, :, :nt].T)   # query per target
            indices.append((src.astype(np.int64), np.arange(nt, dtype=np.int64)))
    else:
        indices = [(np.zeros(0, np.int64), np.zeros(0, np.int64)) for _ in range(B)]

    num_boxes = float(max(sum(nts), 1))   # single-device: no dist all_reduce
    # TODO(synk): some focal-loss DETR variants additionally multiply loss_class
    # by the number of queries Q; this follows the mmdet-style sum/num_boxes.

    # ---- step 2a: classification focal loss ----
    target_classes = np.full((B * Q,), C, np.int32)      # background = C
    for b, (src, tgt) in enumerate(indices):
        if len(src):
            lbl = np.asarray(target_labels_list[b], np.int64)[tgt]
            target_classes[b * Q + src] = lbl.astype(np.int32)

    N = B * Q
    rows_blk = 2048
    if N <= rows_blk:
        rows_blk = max(8, int(np.ceil(N / 8)) * 8)
    npad = int(np.ceil(N / rows_blk)) * rows_blk

    # padded rows: logits -100, class = C -> exactly zero focal contribution
    logits_flat = jnp.pad(pred_logits.reshape(N, C).astype(jnp.float32),
                          ((0, npad - N), (0, 0)), constant_values=-100.0)
    cls_col = np.full((npad, 1), C, np.int32)
    cls_col[:N, 0] = target_classes

    focal_sum = compute_focal_sum(logits_flat, jnp.asarray(cls_col), rows_blk)

    # ---- step 2b: matched-box L1 / GIoU losses ----
    M = int(sum(len(src) for src, _ in indices))
    mpad = max(LANE, int(np.ceil(max(M, 1) / LANE)) * LANE)
    flat_idx = np.zeros((mpad,), np.int32)
    tm_np = np.full((4, mpad), 0.5, np.float32)
    mask = np.zeros((1, mpad), np.float32)
    pos = 0
    for b, (src, tgt) in enumerate(indices):
        n = len(src)
        if n:
            flat_idx[pos:pos + n] = (b * Q + src).astype(np.int32)
            tm_np[:, pos:pos + n] = np.asarray(target_boxes_list[b], np.float32)[tgt].T
            mask[0, pos:pos + n] = 1.0
            pos += n

    # gather matched predicted boxes on device (avoids an extra B*Q*4 D2H + host gather)
    pm_t = jnp.take(pred_boxes.reshape(B * Q, 4).astype(jnp.float32),
                    jnp.asarray(flat_idx), axis=0).T            # (4, Mpad)

    box_sums = compute_box_sums(pm_t, jnp.asarray(tm_np), jnp.asarray(mask))

    return {
        "loss_class": focal_sum / num_boxes * W_CLASS,
        "loss_bbox":  box_sums[0] / num_boxes * W_BBOX,
        "loss_giou":  box_sums[1] / num_boxes * W_GIOU,
    }


if __name__ == "__main__":
    # sanity-check the host assignment solver against brute force on a tiny case
    rng = np.random.RandomState(0)
    ctest = rng.rand(3, 7)
    m = hungarian_assignment(ctest)
    assert len(set(m.tolist())) == 3
    best = min(sum(ctest[i, perm[i]] for i in range(3))
               for perm in itertools.permutations(range(7), 3))
    assert abs(sum(ctest[i, m[i]] for i in range(3)) - best) < 1e-9

    B, Q, C = 2, 16, 8
    key = jax.random.PRNGKey(0)
    k1, k2, k3, k4, k5 = jax.random.split(key, 5)

    pred_logits = jax.random.normal(k1, (B, Q, C), dtype=jnp.float32)
    pred_boxes = jax.nn.sigmoid(jax.random.normal(k2, (B, Q, 4), dtype=jnp.float32))

    num_targets = [2, 3]
    labels_list, boxes_list = [], []
    kk = [k3, k4]
    for b in range(B):
        ka, kb, kc = jax.random.split(kk[b], 3)
        labels_list.append(np.asarray(
            jax.random.randint(ka, (num_targets[b],), 0, C), dtype=np.int64))
        cxcy = np.asarray(jax.random.uniform(kb, (num_targets[b], 2),
                                             minval=0.2, maxval=0.8))
        wh = np.asarray(jax.random.uniform(kc, (num_targets[b], 2),
                                           minval=0.1, maxval=0.3))
        boxes_list.append(np.concatenate([cxcy, wh], axis=1).astype(np.float32))

    losses = detr_criterion(pred_logits, pred_boxes, labels_list, boxes_list)
    for v in losses.values():
        jax.block_until_ready(v)
    assert all(np.isfinite(np.asarray(v)) for v in losses.values())
    print("KERNEL_OK")
</pallas_src>

<mosaic_0001>
module attributes {stable_mosaic.version = 11 : i64} {
  func.func @cost_kernel(%arg0: i32, %arg1: memref<1x16x8xf32, #tpu.memory_space<vmem>>, %arg2: memref<1x16x4xf32, #tpu.memory_space<vmem>>, %arg3: memref<1x1x128xi32, #tpu.memory_space<vmem>>, %arg4: memref<1x4x128xf32, #tpu.memory_space<vmem>>, %arg5: memref<1x16x128xf32, #tpu.memory_space<vmem>>) attributes {dimension_semantics = [#tpu.dimension_semantics<parallel>], iteration_bounds = array<i64: 2>, scalar_prefetch = 0 : i64, scratch_operands = 0 : i64, tpu.core_type = #tpu.core_type<tc>, window_params = [{transform_indices = @transform_0, window_bounds = array<i64: 1, 16, 8>}, {transform_indices = @transform_1, window_bounds = array<i64: 1, 16, 4>}, {transform_indices = @transform_2, window_bounds = array<i64: 1, 1, 128>}, {transform_indices = @transform_3, window_bounds = array<i64: 1, 4, 128>}, {transform_indices = @transform_4, window_bounds = array<i64: 1, 16, 128>}]} {
    %c0 = arith.constant 0 : index
    %c0_0 = arith.constant 0 : index
    %c0_1 = arith.constant 0 : index
    %0 = vector.load %arg1[%c0, %c0_0, %c0_1] : memref<1x16x8xf32, #tpu.memory_space<vmem>>, vector<1x16x8xf32>
    %1 = math.absf %0 : vector<1x16x8xf32>
    %cst = arith.constant 0.000000e+00 : f32
    %2 = vector.broadcast %cst : f32 to vector<1x16x8xf32>
    %3 = arith.subf %2, %1 : vector<1x16x8xf32>
    %4 = math.exp %3 : vector<1x16x8xf32>
    %cst_2 = arith.constant 1.000000e+00 : f32
    %5 = vector.broadcast %cst_2 : f32 to vector<1x16x8xf32>
    %6 = arith.addf %5, %4 : vector<1x16x8xf32>
    %7 = math.log %6 : vector<1x16x8xf32>
    %cst_3 = arith.constant 0.000000e+00 : f32
    %8 = vector.broadcast %cst_3 : f32 to vector<1x16x8xf32>
    %9 = arith.cmpf oge, %0, %8 : vector<1x16x8xf32>
    %cst_4 = arith.constant 1.000000e+00 : f32
    %10 = vector.broadcast %cst_4 : f32 to vector<1x16x8xf32>
    %11 = arith.select %9, %10, %4 : vector<1x16x8xi1>, vector<1x16x8xf32>
    %cst_5 = arith.constant 1.000000e+00 : f32
    %12 = vector.broadcast %cst_5 : f32 to vector<1x16x8xf32>
    %13 = arith.addf %12, %4 : vector<1x16x8xf32>
    %14 = arith.divf %11, %13 : vector<1x16x8xf32>
    %15 = arith.mulf %14, %14 : vector<1x16x8xf32>
    %cst_6 = arith.constant 7.500000e-01 : f32
    %16 = vector.broadcast %cst_6 : f32 to vector<1x16x8xf32>
    %17 = arith.mulf %16, %15 : vector<1x16x8xf32>
    %cst_7 = arith.constant 0.000000e+00 : f32
    %18 = vector.broadcast %cst_7 : f32 to vector<1x16x8xf32>
    %19 = arith.maximumf %0, %18 : vector<1x16x8xf32>
    %20 = arith.addf %19, %7 : vector<1x16x8xf32>
    %21 = arith.mulf %17, %20 : vector<1x16x8xf32>
    %cst_8 = arith.constant 1.000000e+00 : f32
    %22 = vector.broadcast %cst_8 : f32 to vector<1x16x8xf32>
    %23 = arith.subf %22, %14 : vector<1x16x8xf32>
    %cst_9 = arith.constant 1.000000e+00 : f32
    %24 = vector.broadcast %cst_9 : f32 to vector<1x16x8xf32>
    %25 = arith.subf %24, %14 : vector<1x16x8xf32>
    %26 = arith.mulf %23, %25 : vector<1x16x8xf32>
    %cst_10 = arith.constant 2.500000e-01 : f32
    %27 = vector.broadcast %cst_10 : f32 to vector<1x16x8xf32>
    %28 = arith.mulf %27, %26 : vector<1x16x8xf32>
    %cst_11 = arith.constant 0.000000e+00 : f32
    %29 = vector.broadcast %cst_11 : f32 to vector<1x16x8xf32>
    %30 = arith.subf %29, %0 : vector<1x16x8xf32>
    %cst_12 = arith.constant 0.000000e+00 : f32
    %31 = vector.broadcast %cst_12 : f32 to vector<1x16x8xf32>
    %32 = arith.maximumf %30, %31 : vector<1x16x8xf32>
    %33 = arith.addf %32, %7 : vector<1x16x8xf32>
    %34 = arith.mulf %28, %33 : vector<1x16x8xf32>
    %35 = arith.subf %34, %21 : vector<1x16x8xf32>
    %c0_13 = arith.constant 0 : index
    %c0_14 = arith.constant 0 : index
    %c0_15 = arith.constant 0 : index
    %36 = vector.load %arg3[%c0_13, %c0_14, %c0_15] : memref<1x1x128xi32, #tpu.memory_space<vmem>>, vector<1x1x128xi32>
    %37 = tpu.iota {dimensions = array<i32: 1>} : vector<1x8x128xi32>
    %38 = vector.broadcast %36 : vector<1x1x128xi32> to vector<1x8x128xi32>
    %39 = arith.cmpi eq, %38, %37 : vector<1x8x128xi32>
    %40 = arith.extui %39 : vector<1x8x128xi1> to vector<1x8x128xi32>
    %41 = arith.sitofp %40 : vector<1x8x128xi32> to vector<1x8x128xf32>
    %42 = arith.truncf %41 : vector<1x8x128xf32> to vector<1x8x128xbf16>
    %43 = arith.truncf %35 : vector<1x16x8xf32> to vector<1x16x8xbf16>
    "tpu.trace_start"() <{level = 10 : i32, message = "bqc,bct->bqt"}> : () -> ()
    %cst_16 = arith.constant dense<0.000000e+00> : vector<1x16x128xf32>
    %44 = tpu.matmul %43, %42, %cst_16 {dimension_numbers = #tpu.dot_dimension_numbers<[2], [1], [1], [2], [0, 0, 0, 1, 1, 2], [0], [0]>} : vector<1x16x8xbf16>, vector<1x8x128xbf16>, vector<1x16x128xf32> -> vector<1x16x128xf32>
    "tpu.trace_stop"() : () -> ()
    %c0_17 = arith.constant 0 : index
    %c0_18 = arith.constant 0 : index
    %c0_19 = arith.constant 0 : index
    %45 = vector.load %arg2[%c0_17, %c0_18, %c0_19] : memref<1x16x4xf32, #tpu.memory_space<vmem>>, vector<1x16x4xf32>
    %c0_20 = arith.constant 0 : index
    %c0_21 = arith.constant 0 : index
    %c0_22 = arith.constant 0 : index
    %46 = vector.load %arg4[%c0_20, %c0_21, %c0_22] : memref<1x4x128xf32, #tpu.memory_space<vmem>>, vector<1x4x128xf32>
    %47 = vector.extract_strided_slice %45 {offsets = [0, 0, 0], sizes = [1, 16, 1], strides = [1, 1, 1]} : vector<1x16x4xf32> to vector<1x16x1xf32>
    %48 = vector.extract_strided_slice %45 {offsets = [0, 0, 1], sizes = [1, 16, 1], strides = [1, 1, 1]} : vector<1x16x4xf32> to vector<1x16x1xf32>
    %49 = vector.extract_strided_slice %45 {offsets = [0, 0, 2], sizes = [1, 16, 1], strides = [1, 1, 1]} : vector<1x16x4xf32> to vector<1x16x1xf32>
    %50 = vector.extract_strided_slice %45 {offsets = [0, 0, 3], sizes = [1, 16, 1], strides = [1, 1, 1]} : vector<1x16x4xf32> to vector<1x16x1xf32>
    %51 = vector.extract_strided_slice %46 {offsets = [0, 0, 0], sizes = [1, 1, 128], strides = [1, 1, 1]} : vector<1x4x128xf32> to vector<1x1x128xf32>
    %52 = vector.extract_strided_slice %46 {offsets = [0, 1, 0], sizes = [1, 1, 128], strides = [1, 1, 1]} : vector<1x4x128xf32> to vector<1x1x128xf32>
    %53 = vector.extract_strided_slice %46 {offsets = [0, 2, 0], sizes = [1, 1, 128], strides = [1, 1, 1]} : vector<1x4x128xf32> to vector<1x1x128xf32>
    %54 = vector.extract_strided_slice %46 {offsets = [0, 3, 0], sizes = [1, 1, 128], strides = [1, 1, 1]} : vector<1x4x128xf32> to vector<1x1x128xf32>
    %55 = vector.broadcast %47 : vector<1x16x1xf32> to vector<1x16x128xf32>
    %56 = vector.broadcast %51 : vector<1x1x128xf32> to vector<1x16x128xf32>
    %57 = arith.subf %55, %56 : vector<1x16x128xf32>
    %58 = math.absf %57 : vector<1x16x128xf32>
    %59 = vector.broadcast %48 : vector<1x16x1xf32> to vector<1x16x128xf32>
    %60 = vector.broadcast %52 : vector<1x1x128xf32> to vector<1x16x128xf32>
    %61 = arith.subf %59, %60 : vector<1x16x128xf32>
    %62 = math.absf %61 : vector<1x16x128xf32>
    %63 = arith.addf %58, %62 : vector<1x16x128xf32>
    %64 = vector.broadcast %49 : vector<1x16x1xf32> to vector<1x16x128xf32>
    %65 = vector.broadcast %53 : vector<1x1x128xf32> to vector<1x16x128xf32>
    %66 = arith.subf %64, %65 : vector<1x16x128xf32>
    %67 = math.absf %66 : vector<1x16x128xf32>
    %68 = arith.addf %63, %67 : vector<1x16x128xf32>
    %69 = vector.broadcast %50 : vector<1x16x1xf32> to vector<1x16x128xf32>
    %70 = vector.broadcast %54 : vector<1x1x128xf32> to vector<1x16x128xf32>
    %71 = arith.subf %69, %70 : vector<1x16x128xf32>
    %72 = math.absf %71 : vector<1x16x128xf32>
    %73 = arith.addf %68, %72 : vector<1x16x128xf32>
    %cst_23 = arith.constant 5.000000e-01 : f32
    %74 = vector.broadcast %cst_23 : f32 to vector<1x16x1xf32>
    %75 = arith.mulf %74, %49 : vector<1x16x1xf32>
    %76 = arith.subf %47, %75 : vector<1x16x1xf32>
    %cst_24 = arith.constant 5.000000e-01 : f32
    %77 = vector.broadcast %cst_24 : f32 to vector<1x16x1xf32>
    %78 = arith.mulf %77, %50 : vector<1x16x1xf32>
    %79 = arith.subf %48, %78 : vector<1x16x1xf32>
    %cst_25 = arith.constant 5.000000e-01 : f32
    %80 = vector.broadcast %cst_25 : f32 to vector<1x16x1xf32>
    %81 = arith.mulf %80, %49 : vector<1x16x1xf32>
    %82 = arith.addf %47, %81 : vector<1x16x1xf32>
    %cst_26 = arith.constant 5.000000e-01 : f32
    %83 = vector.broadcast %cst_26 : f32 to vector<1x16x1xf32>
    %84 = arith.mulf %83, %50 : vector<1x16x1xf32>
    %85 = arith.addf %48, %84 : vector<1x16x1xf32>
    %cst_27 = arith.constant 5.000000e-01 : f32
    %86 = vector.broadcast %cst_27 : f32 to vector<1x1x128xf32>
    %87 = arith.mulf %86, %53 : vector<1x1x128xf32>
    %88 = arith.subf %51, %87 : vector<1x1x128xf32>
    %cst_28 = arith.constant 5.000000e-01 : f32
    %89 = vector.broadcast %cst_28 : f32 to vector<1x1x128xf32>
    %90 = arith.mulf %89, %54 : vector<1x1x128xf32>
    %91 = arith.subf %52, %90 : vector<1x1x128xf32>
    %cst_29 = arith.constant 5.000000e-01 : f32
    %92 = vector.broadcast %cst_29 : f32 to vector<1x1x128xf32>
    %93 = arith.mulf %92, %53 : vector<1x1x128xf32>
    %94 = arith.addf %51, %93 : vector<1x1x128xf32>
    %cst_30 = arith.constant 5.000000e-01 : f32
    %95 = vector.broadcast %cst_30 : f32 to vector<1x1x128xf32>
    %96 = arith.mulf %95, %54 : vector<1x1x128xf32>
    %97 = arith.addf %52, %96 : vector<1x1x128xf32>
    %98 = arith.subf %82, %76 : vector<1x16x1xf32>
    %99 = arith.subf %85, %79 : vector<1x16x1xf32>
    %100 = arith.mulf %98, %99 : vector<1x16x1xf32>
    %101 = arith.subf %94, %88 : vector<1x1x128xf32>
    %102 = arith.subf %97, %91 : vector<1x1x128xf32>
    %103 = arith.mulf %101, %102 : vector<1x1x128xf32>
    %104 = vector.broadcast %82 : vector<1x16x1xf32> to vector<1x16x128xf32>
    %105 = vector.broadcast %94 : vector<1x1x128xf32> to vector<1x16x128xf32>
    %106 = arith.minimumf %104, %105 : vector<1x16x128xf32>
    %107 = vector.broadcast %76 : vector<1x16x1xf32> to vector<1x16x128xf32>
    %108 = vector.broadcast %88 : vector<1x1x128xf32> to vector<1x16x128xf32>
    %109 = arith.maximumf %107, %108 : vector<1x16x128xf32>
    %110 = arith.subf %106, %109 : vector<1x16x128xf32>
    %cst_31 = arith.constant 0.000000e+00 : f32
    %111 = vector.broadcast %cst_31 : f32 to vector<1x16x128xf32>
    %112 = arith.maximumf %110, %111 : vector<1x16x128xf32>
    %113 = vector.broadcast %85 : vector<1x16x1xf32> to vector<1x16x128xf32>
    %114 = vector.broadcast %97 : vector<1x1x128xf32> to vector<1x16x128xf32>
    %115 = arith.minimumf %113, %114 : vector<1x16x128xf32>
    %116 = vector.broadcast %79 : vector<1x16x1xf32> to vector<1x16x128xf32>
    %117 = vector.broadcast %91 : vector<1x1x128xf32> to vector<1x16x128xf32>
    %118 = arith.maximumf %116, %117 : vector<1x16x128xf32>
    %119 = arith.subf %115, %118 : vector<1x16x128xf32>
    %cst_32 = arith.constant 0.000000e+00 : f32
    %120 = vector.broadcast %cst_32 : f32 to vector<1x16x128xf32>
    %121 = arith.maximumf %119, %120 : vector<1x16x128xf32>
    %122 = arith.mulf %112, %121 : vector<1x16x128xf32>
    %123 = vector.broadcast %100 : vector<1x16x1xf32> to vector<1x16x128xf32>
    %124 = vector.broadcast %103 : vector<1x1x128xf32> to vector<1x16x128xf32>
    %125 = arith.addf %123, %124 : vector<1x16x128xf32>
    %126 = arith.subf %125, %122 : vector<1x16x128xf32>
    %cst_33 = arith.constant 9.99999997E-7 : f32
    %127 = vector.broadcast %cst_33 : f32 to vector<1x16x128xf32>
    %128 = arith.addf %126, %127 : vector<1x16x128xf32>
    %129 = arith.divf %122, %128 : vector<1x16x128xf32>
    %130 = vector.broadcast %82 : vector<1x16x1xf32> to vector<1x16x128xf32>
    %131 = vector.broadcast %94 : vector<1x1x128xf32> to vector<1x16x128xf32>
    %132 = arith.maximumf %130, %131 : vector<1x16x128xf32>
    %133 = vector.broadcast %76 : vector<1x16x1xf32> to vector<1x16x128xf32>
    %134 = vector.broadcast %88 : vector<1x1x128xf32> to vector<1x16x128xf32>
    %135 = arith.minimumf %133, %134 : vector<1x16x128xf32>
    %136 = arith.subf %132, %135 : vector<1x16x128xf32>
    %137 = vector.broadcast %85 : vector<1x16x1xf32> to vector<1x16x128xf32>
    %138 = vector.broadcast %97 : vector<1x1x128xf32> to vector<1x16x128xf32>
    %139 = arith.maximumf %137, %138 : vector<1x16x128xf32>
    %140 = vector.broadcast %79 : vector<1x16x1xf32> to vector<1x16x128xf32>
    %141 = vector.broadcast %91 : vector<1x1x128xf32> to vector<1x16x128xf32>
    %142 = arith.minimumf %140, %141 : vector<1x16x128xf32>
    %143 = arith.subf %139, %142 : vector<1x16x128xf32>
    %144 = arith.mulf %136, %143 : vector<1x16x128xf32>
    %145 = arith.subf %144, %126 : vector<1x16x128xf32>
    %cst_34 = arith.constant 9.99999997E-7 : f32
    %146 = vector.broadcast %cst_34 : f32 to vector<1x16x128xf32>
    %147 = arith.addf %144, %146 : vector<1x16x128xf32>
    %148 = arith.divf %145, %147 : vector<1x16x128xf32>
    %149 = arith.subf %129, %148 : vector<1x16x128xf32>
    %cst_35 = arith.constant 1.000000e+00 : f32
    %150 = vector.broadcast %cst_35 : f32 to vector<1x16x128xf32>
    %151 = arith.mulf %150, %44 : vector<1x16x128xf32>
    %cst_36 = arith.constant 5.000000e+00 : f32
    %152 = vector.broadcast %cst_36 : f32 to vector<1x16x128xf32>
    %153 = arith.mulf %152, %73 : vector<1x16x128xf32>
    %154 = arith.addf %151, %153 : vector<1x16x128xf32>
    %cst_37 = arith.constant 1.000000e+00 : f32
    %155 = vector.broadcast %cst_37 : f32 to vector<1x16x128xf32>
    %156 = arith.mulf %155, %149 : vector<1x16x128xf32>
    %157 = arith.subf %154, %156 : vector<1x16x128xf32>
    %c0_38 = arith.constant 0 : index
    %c0_39 = arith.constant 0 : index
    %c0_40 = arith.constant 0 : index
    %158 = vector.load %arg5[%c0_38, %c0_39, %c0_40] : memref<1x16x128xf32, #tpu.memory_space<vmem>>, vector<1x16x128xf32>
    tpu.vector_store %arg5[%c0_38, %c0_39, %c0_40], %157 {strides = array<i32>} : memref<1x16x128xf32, #tpu.memory_space<vmem>>, vector<1x16x128xf32>,
    return
  }
  func.func @transform_0(%arg0: i32) -> (i32, i32, i32) {
    %c0_i32 = arith.constant 0 : i32
    %c0_i32_0 = arith.constant 0 : i32
    %c0_i32_1 = arith.constant 0 : i32
    return %arg0, %c0_i32, %c0_i32_0 : i32, i32, i32
  }
  func.func @transform_1(%arg0: i32) -> (i32, i32, i32) {
    %c0_i32 = arith.constant 0 : i32
    %c0_i32_0 = arith.constant 0 : i32
    %c0_i32_1 = arith.constant 0 : i32
    return %arg0, %c0_i32, %c0_i32_0 : i32, i32, i32
  }
  func.func @transform_2(%arg0: i32) -> (i32, i32, i32) {
    %c0_i32 = arith.constant 0 : i32
    %c0_i32_0 = arith.constant 0 : i32
    %c0_i32_1 = arith.constant 0 : i32
    return %arg0, %c0_i32, %c0_i32_0 : i32, i32, i32
  }
  func.func @transform_3(%arg0: i32) -> (i32, i32, i32) {
    %c0_i32 = arith.constant 0 : i32
    %c0_i32_0 = arith.constant 0 : i32
    %c0_i32_1 = arith.constant 0 : i32
    return %arg0, %c0_i32, %c0_i32_0 : i32, i32, i32
  }
  func.func @transform_4(%arg0: i32) -> (i32, i32, i32) {
    %c0_i32 = arith.constant 0 : i32
    %c0_i32_0 = arith.constant 0 : i32
    %c0_i32_1 = arith.constant 0 : i32
    return %arg0, %c0_i32, %c0_i32_0 : i32, i32, i32
  }
}

</mosaic_0001>

<bundles_post_ra>
// kernel: tpu_custom_call.1
= control target key start
LH: loop header
LB: loop body
LE: loop exit
PB: predicated region body
PF: predicated region fallthrough
CT: control target
= control target key end

     0   :  { %9 = vsyncpa [#allocation3], 0  ;;  %s1252_s0 = inlined_call_operand.vmem [shape: f32[2,16,8], index: 0, kind: input, shape index: {}]   ;;  %s1253_s1 = inlined_call_operand.vmem [shape: f32[2,16,4], index: 1, kind: input, shape index: {}]   ;;  %s1254_s2 = inlined_call_operand.vmem [shape: s32[2,1,128], index: 2, kind: input, shape index: {}]   ;;  %s1255_s3 = inlined_call_operand.vmem [shape: f32[2,4,128], index: 3, kind: input, shape index: {}]   ;;  %s1256_s4 = inlined_call_operand.hbm [shape: f32[2,16,128], index: 4, kind: output, shape index: {}]  }
   0x1   :  { %11 = vsyncpa [#allocation3 + $0x1], 0  ;;  %s936_s15 = smov 0   ;;  %s938_s16 = smov 0  }
   0x2   :  { %s940_s17 = smov 0   ;;  %s942_s18 = smov 0  }
   0x3 LB: > { %s957_s19 = sadd.s32 4294967295, %s900_s18   ;;  %s733_s20 = sadd.s32 4294967294, %s900_s18   ;;  %s900_s18 = sphi %s942_s18, %s1272_s18   ;;  %s896_s17 = sphi %s940_s17, %s1271_s17   ;;  %s892_s16 = sphi %s938_s16, %s1270_s16   ;;  %s888_s15 = sphi %s936_s15, %s1269_s15  }
   0x4   : > { %s961_s21 = sadd.s32 1, %s900_s18   ;;  %s128_s22 = sadd.s32 1, %s896_s17 }
   0x5   : > { %s125_s23 = ssub.s32 %s900_s18, %s961_s21  ;;  %p138_p0 = scmp.ne.s32.totalorder %s896_s17, %s892_s16 }
   0x6   : > { %p126_p1 = scmp.eq.s32.totalorder %s125_s23, 0  ;;  %p139_p2 = scmp.eq.s32.totalorder %s957_s19, 1 }
   0x7   : > { %p144_p3 = scmp.ne.s32.totalorder %s892_s16, %s888_s15  ;;  %p145_p4 = scmp.eq.s32.totalorder %s733_s20, 1 }
   0x8   : > { %s972_s24 = scalar_select %p126_p1, %s896_s17, %s128_s22  }
   0x9   : > { %p974_p5 = por %p139_p2, %p138_p0  ;;  %p978_p6 = por %p145_p4, %p144_p3 }
   0xa   : > { %p736_p7 = scmp.ge.s32.totalorder %s900_s18, 1  ;;  %p192_p8 = scmp.lt.s32.totalorder %s900_s18, 3 }
   0xc   : > { %p193_p9 = pnand %p736_p7, %p192_p8 }
   0xd   : > { %p230_p10 = scmp.lt.s32.totalorder (!%p193_p9), %s957_s19, 1  ;;  %s903_s6 = smov (!%p193_p9), 126  }
   0xe   : > { %196 = sbr.rel (%p193_p9) target bundleno = 410 (0x19a), region = 36  ;;  %s905_s13 = smov (!%p193_p9), 127  }
  0x13   : > { %v902_v0 = vmov 0   ;;  %s988_s27 = scalar_select %p230_p10, %s957_s19, 1  ;;  %v904_v5 = vmov 1   ;;  %v325_v26 = vlaneseq  ;;  %vm600_vm0 = vcmask 1043456  }
  0x14   : > { %801 = vset.pattern.permute.xlu1 %v902_v0  ;;  %807 = vset.pattern.permute.xlu0 %v902_v0  ;;  %v906_v32 = vmov 2   ;;  %v907_v33 = vmov 0.0   ;;  %vm596_vm12 = vcmask 64512  }
  0x15   : > { %802 = vset.pattern.permute.xlu2 %v902_v0  ;;  %s750_s28 = sshll.u32 %s988_s27, 4  ;;  %s242_s9 = scalar_lea.vmem %s1254_s2, %s988_s27  ;;  %v326_v28 = vshrl.u32 %v325_v26, 7 }
  0x16   : > { %s239_s5 = scalar_lea.vmem %s1253_s1, %s750_s28  ;;  %s234_s12 = scalar_lea.vmem %s1252_s0, %s750_s28  ;;  %v817_v27 = vld [vmem:[%s242_s9] ss:$0 sm:$0xff] }
  0x17   : > { %v995_v1 = vld [vmem:[%s239_s5] sm:$0xff]  ;;  %v999_v3 = vld [vmem:[%s239_s5 + $0x8] sm:$0xff]  ;;  %vm328_vm1 = vcmp.eq.s32.totalorder %v817_v27, %v326_v28  ;;  %s742_s22 = sshll.u32 %s988_s27, 2  ;;  %s227_s27 = sand.u32 1, %s892_s16  }
  0x18   : > { %v397_v2 = vmul.f32 0.5, %v995_v1  ;;  %339 = vperm.xlu1 %801, %v995_v1   ;;  %v398_v4 = vmul.f32 0.5, %v999_v3  ;;  %v1022_v10 = vld [vmem:[%s234_s12] sm:$0xff]  ;;  %v1024_v11 = vld [vmem:[%s234_s12 + $0x8] sm:$0xff]  ;;  %v743_v34 = vsel %vm328_vm1, 1.0, %v907_v33  ;;  %s246_s29 = scalar_lea.vmem %s1255_s3, %s742_s22  ;;  %s737_s30 = sshll.u32 %s227_s27, 4 }
  0x19   : > { %v250_v12 = vand.u32 2147483647, %v1022_v10  ;;  %v251_v13 = vand.u32 2147483647, %v1024_v11  ;;  %v331_v38 = vpack.c.bf16 %v743_v34, %v743_v34  ;;  %vm264_vm6 = vcmp.ge.f32.partialorder %v1022_v10, 0.0  ;;  %s752_s5 = sshll.u32 %s957_s19, 4 }
  0x1a   : > { %401 = vrot.lane.b32.xlu0 %v397_v2, %s903_s6  ;;  %vm265_vm7 = vcmp.ge.f32.partialorder %v1024_v11, 0.0  ;;  %v314_v53 = vsub.f32 0.0, %v1022_v10  ;;  %v315_v56 = vsub.f32 0.0, %v1024_v11  ;;  %v302_v60 = vmax.f32 %v1022_v10, 0.0  ;;  %s634_s19 = scalar_lea.hbm %s1256_s4, %s752_s5  ;;  %s229_s8 = scalar_lea.vmem [#allocation2], %s737_s30 }
  0x1b   : > { %v252_v15 = vsub.f32 0.0, %v250_v12  ;;  %v253_v16 = vsub.f32 0.0, %v251_v13  ;;  %v602_v43 = vsel %vm600_vm0, %v331_v38, 0  ;;  %v303_v2 = vmax.f32 %v1024_v11, 0.0  ;;  %s635_s9 = sshll.u32 %s229_s8, 4  ;;  %s637_s10 = sshll.u32 %s634_s19, 4  ;;  %s636_s9 = int_to_ptr.vmem [resolvable:$true] %s635_s9  ;;  %s638_s10 = int_to_ptr.hbm [resolvable:$true] %s637_s10 }
  0x1c   : > { %611 = vmatpush.bf16.msra.mxu0 %v602_v43  ;;  %v316_v12 = vmax.f32 %v314_v53, 0.0  ;;  %v317_v10 = vmax.f32 %v315_v56, 0.0  ;;  %s623_s11 = scalar_lea.sflag [#allocation3], %s227_s27  ;;  %s852_s12 = sshra.s32 %s638_s10, 4  ;;  %s853_s12 = int_to_ptr.hbm [resolvable:$true] %s852_s12 }
  0x1d   : > { %v254_v19 = vmul.f32 1.442695, %v252_v15  ;;  %v256_v20 = vmul.f32 1.442695, %v253_v16  ;;  %s858_s22 = scalar_lea.hbm %s1256_s4, 32  ;;  %p859_p0 = scmp.lt.s32.totalorder %s853_s12, %s1256_s4 }
  0x1f   : > { %818 = vpow2.f32 %v254_v19 }
  0x20   : > { %803 = vset.pattern.permute.xlu1 %v904_v5  ;;  %820 = vpow2.f32 %v256_v20 }
  0x22   : > { %403 = vrot.lane.b32.xlu0 %v398_v4, %s903_s6 }
  0x25   : > { %v819_v22 = vpop.eup %818 }
  0x26   : > { %v821_v23 = vpop.eup %820  ;;  %v258_v24 = vadd.f32 1.0, %v819_v22  ;;  %v266_v54 = vsel %vm264_vm6, 1.0, %v819_v22 }
  0x27   : > { %v259_v25 = vadd.f32 1.0, %v821_v23  ;;  %v267_v58 = vsel %vm265_vm7, 1.0, %v821_v23 }
  0x28   : > { %822 = vrcp.f32 %v258_v24  ;;  %vm273_vm2 = vweird.f32 %v258_v24  ;;  %v277_v35 = vand.u32 2147483647, %v258_v24  ;;  %v279_v36 = vand.u32 2147483648, %v258_v24 }
  0x29   : > { %824 = vrcp.f32 %v259_v25  ;;  %v294_v40 = vand.u32 2147483648, %v259_v25  ;;  %vm288_vm4 = vweird.f32 %v259_v25  ;;  %v292_v42 = vand.u32 2147483647, %v259_v25 }
  0x2a   : > { %826 = vlog2.f32 %v258_v24  ;;  %v280_v47 = vor.u32 1.1754944e-38, %v279_v36  ;;  %vm278_vm9 = vcmp.eq.f32.partialorder %v277_v35, 8.507059e+37 }
  0x2b   : > { %828 = vlog2.f32 %v259_v25  ;;  %v295_v52 = vor.u32 1.1754944e-38, %v294_v40  ;;  %vm293_vm11 = vcmp.eq.f32.partialorder %v292_v42, 8.507059e+37  ;;  %v908_v40 = vmov 3  }
  0x2e   : > { %v823_v29 = vpop.eup %822 }
  0x2f   : > { %v825_v30 = vpop.eup %824  ;;  %v269_v31 = vmul.f32 %v823_v29, %v258_v24  ;;  %vm274_vm3 = vweird.f32 %v823_v29 }
  0x30   : > { %v284_v37 = vmul.f32 %v825_v30, %v259_v25  ;;  %vm289_vm5 = vweird.f32 %v825_v30  ;;  %v827_v45 = vpop.eup %826  ;;  %vm1053_vm8 = vmor %vm273_vm2, %vm274_vm3 }
  0x31   : > { %v270_v39 = vsub.f32 1.0, %v269_v31  ;;  %v829_v49 = vpop.eup %828  ;;  %vm1058_vm10 = vmor %vm288_vm4, %vm289_vm5  ;;  %v261_v57 = vmul.f32 0.6931472, %v827_v45  ;;  %v1100_v45 = vld [vmem:[%s246_s29] sm:$0xf] }
  0x32   : > { %v285_v41 = vsub.f32 1.0, %v284_v37  ;;  %v263_v61 = vmul.f32 0.6931472, %v829_v49 }
  0x33   : > { %v271_v44 = vmul.f32 %v823_v29, %v270_v39  ;;  %v304_v15 = vadd.f32 %v302_v60, %v261_v57  ;;  %v318_v23 = vadd.f32 %v316_v12, %v261_v57 }
  0x34   : > { %v286_v48 = vmul.f32 %v825_v30, %v285_v41  ;;  %v305_v19 = vadd.f32 %v303_v2, %v263_v61  ;;  %v319_v26 = vadd.f32 %v317_v10, %v263_v61 }
  0x35   : > { %v272_v50 = vadd.f32 %v823_v29, %v271_v44 }
  0x36   : > { %v287_v55 = vadd.f32 %v825_v30, %v286_v48 }
  0x37   : > { %v276_v59 = vsel %vm1053_vm8, %v823_v29, %v272_v50 }
  0x38   : > { %v281_v62 = vsel %vm278_vm9, %v280_v47, %v276_v59  ;;  %v291_v63 = vsel %vm1058_vm10, %v825_v30, %v287_v55 }
  0x39   : > { %v282_v4 = vmul.f32 %v281_v62, %v266_v54 }
  0x3b   : > { %v308_v16 = vsub.f32 1.0, %v282_v4 }
  0x3d   : > { %v310_v22 = vmul.f32 %v308_v16, %v308_v16 }
  0x3f   : > { %v312_v28 = vmul.f32 0.25, %v310_v22 }
  0x41   : > { %v320_v31 = vmul.f32 %v318_v23, %v312_v28 }
  0x8a   : > { %v1082_v41 = vpop.permute.xlu1 %339 }
  0x8c   : > { %v402_v6 = vpop.permute.xlu0 %401 }
  0x8d   : > { %v1008_v7 = vsub.f32 %v995_v1, %v402_v6  ;;  %v1011_v8 = vadd.f32 %v402_v6, %v995_v1  ;;  %v296_v6 = vsel %vm293_vm11, %v295_v52, %v291_v63 }
  0x8e   : > { %v297_v13 = vmul.f32 %v296_v6, %v267_v58 }
  0x8f   : > { %449 = vperm.xlu0 %807, %v1008_v7   ;;  %v1019_v9 = vsub.f32 %v1011_v8, %v1008_v7 }
  0x90   : > { %v309_v20 = vsub.f32 1.0, %v297_v13 }
  0x91   : > { %421 = vrot.lane.b32.xlu1 %v1019_v9, %s905_s13 }
  0x92   : > { %v311_v25 = vmul.f32 %v309_v20, %v309_v20 }
  0x94   : > { %v404_v14 = vpop.permute.xlu0 %403  ;;  %v313_v30 = vmul.f32 0.25, %v311_v25 }
  0x95   : > { %v408_v17 = vsub.f32 %v999_v3, %v404_v14  ;;  %v1030_v18 = vadd.f32 %v404_v14, %v999_v3  ;;  %v298_v14 = vmul.f32 %v282_v4, %v282_v4 }
  0x97   : > { %808 = vset.pattern.permute.xlu0 %v904_v5  ;;  %v1034_v21 = vsub.f32 %v1030_v18, %v408_v17  ;;  %v300_v11 = vmul.f32 0.75, %v298_v14 }
  0x98   : > { %353 = vperm.xlu0 %808, %v995_v1  }
  0x99   : > { %357 = vperm.xlu1 %803, %v999_v3   ;;  %423 = vrot.lane.b32.xlu2 %v1034_v21, %s905_s13  ;;  %v306_v27 = vmul.f32 %v304_v15, %v300_v11  ;;  %s854_s13 = scalar_lea.hbm %s853_s12, 16 }
  0x9a   : > { %p855_p11 = scmp.ne.s32.totalorder %s853_s12, %s854_s13  ;;  %p860_p1 = scmp.lt.s32.totalorder %s858_s22, %s854_s13 }
  0x9b   : > { %v322_v33 = vsub.f32 %v320_v31, %v306_v27 }
  0x9c   : > { %p856_p12 = pnand %p855_p11, %p974_p5  ;;  %p861_p2 = por %p860_p1, %p859_p0 }
  0x9d   : > { %v332_v35 = vpack.c.bf16 %v322_v33, %v322_v33 }
  0x9e   : > { %p857_p13 = pneg %p856_p12 }
  0x9f   : > { %v593_v37 = vunpack.c.l.b16 %v332_v35 }
  0xa0   : > { %480 = vperm.xlu0 %808, %v408_v17   ;;  %p862_p3 = pnand %p861_p2, %p857_p13 }
  0xa1   : > { %805 = vset.pattern.permute.xlu1 %v902_v0  ;;  %344 = vperm.xlu2 %802, %v999_v3  }
  0xa2   : > { %436 = vperm.xlu1 %805, %v1011_v8  }
  0xa8   : > { %815 = vset.pattern.permute.xlu0 %v908_v40 }
  0xa9   : > { %804 = vset.pattern.permute.xlu2 %v906_v32  ;;  %387 = vperm.xlu0 %815, %v999_v3  }
  0xaa   : > { %454 = vperm.xlu1 %805, %v408_v17   ;;  %368 = vperm.xlu2 %804, %v995_v1   ;;  %v299_v17 = vmul.f32 %v297_v13, %v297_v13 }
  0xac   : > { %v301_v24 = vmul.f32 0.75, %v299_v17 }
  0xae   : > { %v307_v29 = vmul.f32 %v305_v19, %v301_v24 }
  0xb1   : > { %816 = vset.pattern.permute.xlu0 %v902_v0 }
  0xb2   : > { %810 = vset.pattern.permute.xlu1 %v904_v5  ;;  %806 = vset.pattern.permute.xlu2 %v902_v0 }
  0xb3   : > { %469 = vperm.xlu1 %810, %v1030_v18   ;;  %441 = vperm.xlu2 %806, %v1030_v18   ;;  %v321_v18 = vmul.f32 %v319_v26, %v313_v30 }
  0xb5   : > { %v323_v34 = vsub.f32 %v321_v18, %v307_v29 }
  0xb7   : > { %v333_v36 = vpack.c.bf16 %v323_v34, %v323_v34 }
  0xb9   : > { %v594_v38 = vunpack.c.l.b16 %v333_v36 }
  0xbb   : > { %809 = vset.pattern.permute.xlu2 %v904_v5  ;;  %811 = vset.pattern.permute.xlu1 %v902_v0  ;;  %v595_v39 = vpack.c.b16 %v594_v38, %v593_v37 }
  0xbc   : > { %465 = vperm.xlu2 %809, %v1011_v8  }
  0xbd   : > { %744 = vmatmul.msk.bf16.vlgmr.msra.gmra.mxu0 %vm596_vm12, %v595_v39 }
  0xc4   : > { %476 = vperm.xlu2 %809, %v1008_v7  }
  0xcc   : > { %812 = vset.pattern.permute.xlu2 %v902_v0 }
  0xf3   : > { %v424_v5 = vpop.permute.xlu2 %423 }
  0xf4   : > { %v428_v8 = vmul.f32 %v424_v5, %v1034_v21 }
  0xf6   : > { %499 = vperm.xlu2 %812, %v428_v8  }
  0xfb   : > { %v1088_v43 = vpop.permute.xlu2 %344 }
  0xfe   : > { %814 = vset.pattern.permute.xlu2 %v908_v40 }
  0xff   : > { %383 = vperm.xlu2 %814, %v995_v1  }
 0x101   : > { %v450_v1 = vpop.permute.xlu0 %449 }
 0x103   : > { %v422_v7 = vpop.permute.xlu1 %421 }
 0x104   : > { %v427_v42 = vmul.f32 %v422_v7, %v1019_v9  ;;  %v1092_v44 = vpop.permute.xlu2 %368 }
 0x106   : > { %494 = vperm.xlu1 %811, %v427_v42  }
 0x10a   : > { %v1103_v47 = vpop.permute.xlu0 %353 }
 0x10b   : > { %v1090_v0 = vpop.permute.xlu1 %357 }
 0x10d   : > { %v442_v9 = vpop.permute.xlu2 %441 }
 0x10e   : > { %813 = vset.pattern.permute.xlu1 %v906_v32  ;;  %v411_v32 = vmul.f32 0.5, %v1100_v45 }
 0x10f   : > { %372 = vperm.xlu1 %813, %v999_v3  }
 0x110   : > { %v413_v46 = vrot.slane %v411_v32, 2 }
 0x112   : > { %v415_v49 = vsub.f32 %v1100_v45, %v413_v46  ;;  %v416_v50 = vadd.f32 %v413_v46, %v1100_v45  ;;  %v481_v53 = vpop.permute.xlu0 %480 }
 0x114   : > { %v1095_v21 = vpop.permute.xlu1 %436  ;;  %v429_v51 = vsub.f32 %v416_v50, %v415_v49  ;;  %v472_v54 = vperm.slane %v416_v50, 1  ;;  %v483_v55 = vperm.slane %v415_v49, 1  ;;  %v457_v58 = vperm.slane %v415_v49, 0 }
 0x115   : > { %v444_v61 = vperm.slane %v416_v50, 0  ;;  %v375_v49 = vperm.slane %v1100_v45, 2 }
 0x116   : > { %v466_v48 = vpop.permute.xlu2 %465  ;;  %v431_v56 = vrot.slane %v429_v51, 1  ;;  %v485_v60 = vmax.f32 %v481_v53, %v483_v55  ;;  %v548_v16 = vmin.f32 %v481_v53, %v483_v55  ;;  %v541_v30 = vmin.f32 %v450_v1, %v457_v58 }
 0x117   : > { %v446_v2 = vmin.f32 %v442_v9, %v444_v61  ;;  %v540_v11 = vmax.f32 %v442_v9, %v444_v61  ;;  %v539_v26 = vmax.f32 %v1095_v21, %v444_v61  ;;  %v545_v27 = vmax.f32 %v466_v48, %v472_v54 }
 0x118   : > { %v433_v63 = vmul.f32 %v431_v56, %v429_v51  ;;  %v445_v38 = vmin.f32 %v1095_v21, %v444_v61  ;;  %v473_v39 = vmin.f32 %v466_v48, %v472_v54  ;;  %v458_v40 = vmax.f32 %v450_v1, %v457_v58 }
 0x119   : > { %v543_v18 = vsub.f32 %v539_v26, %v541_v30  ;;  %v360_v9 = vperm.slane %v1100_v45, 1  ;;  %v347_v21 = vperm.slane %v1100_v45, 0 }
 0x11a   : > { %v502_v12 = vperm.slane %v433_v63, 0  ;;  %v460_v42 = vsub.f32 %v445_v38, %v458_v40 }
 0x11b   : > { %v361_v50 = vsub.f32 %v1103_v47, %v360_v9  ;;  %v348_v56 = vsub.f32 %v1082_v41, %v347_v21  ;;  %v362_v61 = vsub.f32 %v1090_v0, %v360_v9 }
 0x11c   : > { %v455_v3 = vpop.permute.xlu1 %454  ;;  %v462_v48 = vmax.f32 %v460_v42, 0.0 }
 0x11d   : > { %v459_v62 = vmax.f32 %v455_v3, %v457_v58  ;;  %v542_v19 = vmin.f32 %v455_v3, %v457_v58  ;;  %v363_v47 = vand.u32 2147483647, %v361_v50 }
 0x11e   : > { %v477_v57 = vpop.permute.xlu2 %476 }
 0x11f   : > { %v461_v6 = vsub.f32 %v446_v2, %v459_v62  ;;  %v544_v24 = vsub.f32 %v540_v11, %v542_v19  ;;  %v547_v25 = vmin.f32 %v477_v57, %v483_v55  ;;  %v484_v35 = vmax.f32 %v477_v57, %v483_v55  ;;  %v388_v2 = vpop.permute.xlu0 %387 }
 0x120   : > { %v349_v57 = vsub.f32 %v1088_v43, %v347_v21  ;;  %v390_v62 = vperm.slane %v1100_v45, 3 }
 0x121   : > { %v463_v14 = vmax.f32 %v461_v6, 0.0  ;;  %v549_v31 = vsub.f32 %v545_v27, %v547_v25  ;;  %v486_v5 = vsub.f32 %v473_v39, %v484_v35 }
 0x122   : > { %v351_v6 = vand.u32 2147483647, %v349_v57 }
 0x123   : > { %v1122_v34 = vmul.f32 %v549_v31, %v543_v18  ;;  %v488_v32 = vmax.f32 %v486_v5, 0.0 }
 0x125   : > { %v470_v52 = vpop.permute.xlu1 %469  ;;  %v1128_v37 = vadd.f32 1e-06, %v1122_v34 }
 0x126   : > { %v474_v59 = vmin.f32 %v470_v52, %v472_v54  ;;  %v546_v15 = vmax.f32 %v470_v52, %v472_v54  ;;  %v1144_v52 = vmul.f32 %v488_v32, %v462_v48 }
 0x127   : > { %vm562_vm4 = vweird.f32 %v1128_v37  ;;  %v568_v50 = vand.u32 2147483648, %v1128_v37 }
 0x128   : > { %v487_v4 = vsub.f32 %v474_v59, %v485_v60  ;;  %v550_v22 = vsub.f32 %v546_v15, %v548_v16  ;;  %v376_v60 = vsub.f32 %v1092_v44, %v375_v49  ;;  %v392_v15 = vsub.f32 %v388_v2, %v390_v62 }
 0x12a   : > { %v489_v10 = vmax.f32 %v487_v4, 0.0  ;;  %v1113_v28 = vmul.f32 %v550_v22, %v544_v24  ;;  %v350_v4 = vand.u32 2147483647, %v348_v56  ;;  %v394_v35 = vand.u32 2147483647, %v392_v15 }
 0x12c   : > { %v1107_v20 = vmul.f32 %v489_v10, %v463_v14  ;;  %v1119_v33 = vadd.f32 1e-06, %v1113_v28  ;;  %v365_v10 = vadd.f32 %v363_v47, %v350_v4  ;;  %v364_v14 = vand.u32 2147483647, %v362_v61 }
 0x12e   : > { %v583_v26 = vand.u32 2147483648, %v1119_v33  ;;  %vm577_vm2 = vweird.f32 %v1119_v33  ;;  %v581_v30 = vand.u32 2147483647, %v1119_v33  ;;  %v366_v31 = vadd.f32 %v364_v14, %v351_v6 }
 0x130   : > { %v584_v32 = vor.u32 1.1754944e-38, %v583_v26  ;;  %vm582_vm6 = vcmp.eq.f32.partialorder %v581_v30, 8.507059e+37 }
 0x13a   : > { %v1177_v27 = vpop.f32.mrf.mxu0 }
 0x150   : > { %v500_v13 = vpop.permute.xlu2 %499 }
 0x151   : > { %v504_v17 = vadd.f32 %v502_v12, %v500_v13  ;;  %v378_v13 = vand.u32 2147483647, %v376_v60 }
 0x153   : > { %v1110_v23 = vsub.f32 %v504_v17, %v1107_v20 }
 0x155   : > { %v1116_v29 = vadd.f32 1e-06, %v1110_v23  ;;  %v554_v40 = vsub.f32 %v1113_v28, %v1110_v23 }
 0x157   : > { %830 = vrcp.f32 %v1116_v29  ;;  %v535_v44 = vand.u32 2147483648, %v1116_v29  ;;  %vm529_vm14 = vweird.f32 %v1116_v29  ;;  %v533_v45 = vand.u32 2147483647, %v1116_v29 }
 0x158   : > { %832 = vrcp.f32 %v1119_v33 }
 0x159   : > { %834 = vrcp.f32 %v1128_v37  ;;  %v536_v25 = vor.u32 1.1754944e-38, %v535_v44  ;;  %vm534_vm1 = vcmp.eq.f32.partialorder %v533_v45, 8.507059e+37 }
 0x15d   : > { %v1125_v36 = vpop.eup %830 }
 0x15e   : > { %v525_v8 = vmul.f32 %v1125_v36, %v1116_v29  ;;  %v1133_v7 = vpop.eup %832  ;;  %vm530_vm13 = vweird.f32 %v1125_v36 }
 0x15f   : > { %v573_v46 = vmul.f32 %v1133_v7, %v1119_v33  ;;  %v1140_v1 = vpop.eup %834  ;;  %vm1167_vm15 = vmor %vm529_vm14, %vm530_vm13  ;;  %vm578_vm0 = vweird.f32 %v1133_v7 }
 0x160   : > { %v526_v3 = vsub.f32 1.0, %v525_v8  ;;  %v558_v59 = vmul.f32 %v1140_v1, %v1128_v37  ;;  %vm1182_vm3 = vmor %vm577_vm2, %vm578_vm0  ;;  %v380_v8 = vadd.f32 %v378_v13, %v365_v10  ;;  %vm563_vm5 = vweird.f32 %v1140_v1 }
 0x161   : > { %v574_v55 = vsub.f32 1.0, %v573_v46  ;;  %v566_v46 = vand.u32 2147483647, %v1128_v37  ;;  %vm1205_vm8 = vmor %vm562_vm4, %vm563_vm5 }
 0x162   : > { %v527_v54 = vmul.f32 %v1125_v36, %v526_v3  ;;  %v559_v0 = vsub.f32 1.0, %v558_v59  ;;  %v615_v59 = vpop.f32.mrf.mxu0 }
 0x163   : > { %v575_v43 = vmul.f32 %v1133_v7, %v574_v55  ;;  %vm567_vm11 = vcmp.eq.f32.partialorder %v566_v46, 8.507059e+37 }
 0x164   : > { %v528_v41 = vadd.f32 %v1125_v36, %v527_v54  ;;  %v560_v29 = vmul.f32 %v1140_v1, %v559_v0 }
 0x165   : > { %v576_v22 = vadd.f32 %v1133_v7, %v575_v43 }
 0x166   : > { %v532_v11 = vsel %vm1167_vm15, %v1125_v36, %v528_v41  ;;  %v561_v3 = vadd.f32 %v1140_v1, %v560_v29 }
 0x167   : > { %v537_v36 = vsel %vm534_vm1, %v536_v25, %v532_v11  ;;  %v580_v42 = vsel %vm1182_vm3, %v1133_v7, %v576_v22 }
 0x168   : > { %v538_v23 = vmul.f32 %v537_v36, %v1107_v20  ;;  %v585_v21 = vsel %vm582_vm6, %v584_v32, %v580_v42  ;;  %v565_v56 = vsel %vm1205_vm8, %v1140_v1, %v561_v3 }
 0x178   : > { %v495_v51 = vpop.permute.xlu1 %494 }
 0x179   : > { %v503_v53 = vadd.f32 %v502_v12, %v495_v51  ;;  %v384_v12 = vpop.permute.xlu2 %383  ;;  %v586_v51 = vmul.f32 %v585_v21, %v554_v40 }
 0x17a   : > { %v391_v17 = vsub.f32 %v384_v12, %v390_v62  ;;  %v569_v62 = vor.u32 1.1754944e-38, %v568_v50 }
 0x17b   : > { %v1150_v58 = vsub.f32 %v503_v53, %v1144_v52  ;;  %v588_v57 = vsub.f32 %v538_v23, %v586_v51 }
 0x17c   : > { %v393_v5 = vand.u32 2147483647, %v391_v17  ;;  %v570_v4 = vsel %vm567_vm11, %v569_v62, %v565_v56 }
 0x17d   : > { %v1158_v63 = vadd.f32 1e-06, %v1150_v58  ;;  %v553_v37 = vsub.f32 %v1122_v34, %v1150_v58 }
 0x17e   : > { %v395_v48 = vadd.f32 %v393_v5, %v380_v8 }
 0x17f   : > { %836 = vrcp.f32 %v1158_v63  ;;  %v518_v54 = vand.u32 2147483647, %v1158_v63  ;;  %vm514_vm9 = vweird.f32 %v1158_v63  ;;  %v571_v6 = vmul.f32 %v570_v4, %v553_v37 }
 0x180   : > { %v589_v2 = vmul.f32 5.0, %v395_v48 }
 0x181   : > { %v373_v19 = vpop.permute.xlu1 %372  ;;  %vm519_vm12 = vcmp.eq.f32.partialorder %v518_v54, 8.507059e+37 }
 0x182   : > { %v377_v24 = vsub.f32 %v373_v19, %v375_v49  ;;  %v520_v49 = vand.u32 2147483648, %v1158_v63  ;;  %v614_v34 = vadd.f32 %v1177_v27, %v589_v2 }
 0x184   : > { %v379_v18 = vand.u32 2147483647, %v377_v24  ;;  %v521_v61 = vor.u32 1.1754944e-38, %v520_v49 }
 0x185   : > { %v837_v39 = vpop.eup %836 }
 0x186   : > { %v510_v33 = vmul.f32 %v837_v39, %v1158_v63  ;;  %v381_v9 = vadd.f32 %v379_v18, %v366_v31  ;;  %vm515_vm7 = vweird.f32 %v837_v39 }
 0x187   : > { %vm516_vm10 = vmor %vm514_vm9, %vm515_vm7 }
 0x188   : > { %v511_v28 = vsub.f32 1.0, %v510_v33  ;;  %v396_v7 = vadd.f32 %v394_v35, %v381_v9 }
 0x18a   : > { %v512_v53 = vmul.f32 %v837_v39, %v511_v28  ;;  %v590_v55 = vmul.f32 5.0, %v396_v7 }
 0x18c   : > { %v513_v60 = vadd.f32 %v837_v39, %v512_v53  ;;  %v616_v47 = vadd.f32 %v615_v59, %v590_v55 }
 0x18e   : > { %v517_v41 = vsel %vm516_vm10, %v837_v39, %v513_v60  ;;  %v619_v1 = vsub.f32 %v616_v47, %v588_v57 }
 0x18f   : > { %v522_v43 = vsel %vm519_vm12, %v521_v61, %v517_v41 }
 0x190   : > { %v523_v63 = vmul.f32 %v522_v43, %v1144_v52  ;;  %621 = vst [vmem:[%s229_s8 + $0x8] sm:$0xff] %v619_v1 }
 0x192   : > { %v587_v58 = vsub.f32 %v523_v63, %v571_v6 }
 0x194   : > { %v618_v12 = vsub.f32 %v614_v34, %v587_v58 }
 0x196   : > { %620 = vst [vmem:[%s229_s8] sm:$0xff] %v618_v12 }
 0x197   : > { %865 = shalt.err (!%p862_p3)
}
 0x198   : > { %s909_s29 = smov 128   ;;  %s910_s27 = smov 8  }
 0x199   : > { %753 = dma.vmem_to_hbm [thread:$0]  (%p974_p5), %s636_s9, 256, %s638_s10, %s623_s11, %s909_s29, %s909_s29, %s910_s27  }
 0x19a PF: > { %p759_p4 = scmp.ge.s32.totalorder %s900_s18, 2  ;;  %s652_s30 = sand.u32 1, %s888_s15  }
 0x19b   : > { %s653_s5 = scalar_lea.sflag [#allocation3], %s652_s30 }
 0x19c   : > { %p756_p7 = pnand %p759_p4, %p978_p6 }
 0x19e   : > { %p757_p8 = pneg %p756_p7 }
 0x1a0   : > { %883 = dma.done.wait (%p757_p8), %s653_s5, 256  }
 0x1a1   : > { %885 = vsyncadd (%p757_p8), %s653_s5, 4294967040  ;;  %p14_p9 = scmp.ge.s32.totalorder %s961_s21, 4   ;;  %s1269_s15 = smov %s892_s16 }
 0x1a2   : > { %s1270_s16 = smov %s896_s17  ;;  %s1271_s17 = smov %s972_s24 }
 0x1a3   : > { %s1272_s18 = smov %s961_s21  ;;  %16 = sbr.rel (!%p14_p9) target bundleno = 3 (0x3), region = 80 }
 0x1a8   :  { %659 = vsyncpa [#allocation3], 1 }
 0x1a9   :  { %661 = vsyncpa [#allocation3 + $0x1], 1 }

</bundles_post_ra>
